<compile_context>
chip_gen: v7x
topology: tpu7x:2x2x1
jax: 0.10.0
libtpu: 0.0.40
codegen_flags: <defaults>
</compile_context>

<pallas_src>
import functools

import jax
import jax.numpy as jnp
from jax.experimental import pallas as pl
from jax.experimental.pallas import tpu as pltpu

EPS = 1e-5
NEG_SLOPE = 0.1
LANES = 128


def _round_up(x, m):
    return (x + m - 1) // m * m


def predictor_kernel(seq_len, x_ref, w1_ref, g1_ref, b1_ref, w2_ref, g2_ref,
                     b2_ref, o_ref, pad1_ref, pad2_ref):
    # x_ref : (B*L, Cin_p)  bf16, channels-last, batch-flattened, lane-padded
    # w*_ref: (3*C_p, C'_p) bf16, conv taps folded into K (k-major rows)
    # g*/b* : (1, C_p)      f32 BatchNorm affine params
    # o_ref : (B*L, Cout_p) f32 — every row is a valid output row
    # pad*_ref: (B*L + 2, C_p) bf16 scratch used to produce the +/-1 row shifts
    n_rows = x_ref.shape[0]                       # B * L
    inv_n = 1.0 / float(n_rows)

    # position of each row inside its length-L sequence (arithmetic, O(1) in B)
    row = jax.lax.broadcasted_iota(jnp.int32, (n_rows, 1), 0)
    pos = row % seq_len
    first = pos == 0                              # no left neighbour  -> conv zero pad
    last = pos == seq_len - 1                     # no right neighbour -> conv zero pad

    def conv_bn_lrelu(center, pad_ref, w_ref, g_ref, b_ref):
        c_p = pad_ref.shape[1]
        zero_row = jnp.zeros((1, c_p), pad_ref.dtype)
        # one big store at sublane offset 1 + two single-row zero stores
        pad_ref[pl.ds(0, 1), :] = zero_row
        pad_ref[pl.ds(n_rows + 1, 1), :] = zero_row
        pad_ref[pl.ds(1, n_rows), :] = center
        prev = pad_ref[pl.ds(0, n_rows), :]       # prev[i] = center[i-1] (aligned read)
        nxt = pad_ref[pl.ds(2, n_rows), :]        # nxt[i]  = center[i+1]
        # zero neighbours that would cross a sequence boundary (= conv zero padding)
        prev = jnp.where(first, 0.0, prev)
        nxt = jnp.where(last, 0.0, nxt)
        # im2col: taps concatenated along lanes -> single K = 3*C MXU dot
        im = jnp.concatenate([prev, center, nxt], axis=1)          # (B*L, 3*C_p) bf16
        h = jnp.dot(im, w_ref[...], preferred_element_type=jnp.float32)
        # BatchNorm1d training-mode batch stats (biased variance), then LeakyReLU(0.1)
        mean = jnp.sum(h, axis=0, keepdims=True) * inv_n
        cen = h - mean                            # reused for variance AND normalization
        var = jnp.sum(cen * cen, axis=0, keepdims=True) * inv_n
        y = cen * (g_ref[...] * jax.lax.rsqrt(var + EPS)) + b_ref[...]
        return jnp.where(y > 0, y, NEG_SLOPE * y)

    a1 = conv_bn_lrelu(x_ref[...], pad1_ref, w1_ref, g1_ref, b1_ref)        # f32
    y2 = conv_bn_lrelu(a1.astype(pad2_ref.dtype), pad2_ref, w2_ref, g2_ref, b2_ref)
    o_ref[...] = y2.astype(o_ref.dtype)           # lane-dense, unmasked store


def predictor_forward(x_ncl, w1, g1, b1, w2, g2, b2):
    """x_ncl: (B, emb_dim, L) like PyTorch. Returns (B, emb_dim, L), f32."""
    B, Cin, L = x_ncl.shape
    Clat = w1.shape[2]
    Cout = w2.shape[2]
    Cin_p = _round_up(Cin, LANES)
    Clat_p = _round_up(Clat, LANES)
    Cout_p = _round_up(Cout, LANES)
    n_rows = B * L

    # fused input prep: NCL -> NLC, cast to bf16, batch-flatten, lane pad (no f32 copy)
    x2d = jnp.transpose(x_ncl, (0, 2, 1)).astype(jnp.bfloat16).reshape(n_rows, Cin)
    x2d = jnp.pad(x2d, ((0, 0), (0, Cin_p - Cin)))

    # conv taps folded into K (k-major), lane-padded, bf16 MXU operands
    w1p = jnp.pad(w1, ((0, 0), (0, Cin_p - Cin), (0, Clat_p - Clat))
                  ).astype(jnp.bfloat16).reshape(3 * Cin_p, Clat_p)
    w2p = jnp.pad(w2, ((0, 0), (0, Clat_p - Clat), (0, Cout_p - Cout))
                  ).astype(jnp.bfloat16).reshape(3 * Clat_p, Cout_p)
    g1p = jnp.pad(g1.astype(jnp.float32), ((0, 0), (0, Clat_p - Clat)))
    b1p = jnp.pad(b1.astype(jnp.float32), ((0, 0), (0, Clat_p - Clat)))
    g2p = jnp.pad(g2.astype(jnp.float32), ((0, 0), (0, Cout_p - Cout)))
    b2p = jnp.pad(b2.astype(jnp.float32), ((0, 0), (0, Cout_p - Cout)))

    out2d = pl.pallas_call(
        functools.partial(predictor_kernel, L),
        out_shape=jax.ShapeDtypeStruct((n_rows, Cout_p), jnp.float32),
        in_specs=[pl.BlockSpec(memory_space=pltpu.MemorySpace.VMEM)] * 7,
        out_specs=pl.BlockSpec(memory_space=pltpu.MemorySpace.VMEM),
        scratch_shapes=[
            pltpu.VMEM((n_rows + 2, Cin_p), jnp.bfloat16),   # row-shift buffer, layer 1
            pltpu.VMEM((n_rows + 2, Clat_p), jnp.bfloat16),  # row-shift buffer, layer 2
        ],
        # explicit scoped-VMEM budget: safe on v5e (16 MiB default) and within v7x's 64 MiB
        compiler_params=pltpu.CompilerParams(vmem_limit_bytes=32 * 1024 * 1024),
    )(x2d, w1p, g1p, b1p, w2p, g2p, b2p)

    # (B*L, Cout_p) -> (B, L, Cout_p) is a free reshape; slice pad lanes, back to NCL
    out = out2d.reshape(B, L, Cout_p)[:, :, :Cout]
    return jnp.transpose(out, (0, 2, 1))


def init_params(key, emb_dim, latent_dim):
    """Deterministic init matching the module's shapes.
    Conv weights created in PyTorch layout (out, in, k) then transposed to (k, in, out)."""
    k1, k2 = jax.random.split(key)
    bnd1 = 1.0 / (emb_dim * 3) ** 0.5
    W1 = jax.random.uniform(k1, (latent_dim, emb_dim, 3), jnp.float32, -bnd1, bnd1)
    bnd2 = 1.0 / (latent_dim * 3) ** 0.5
    W2 = jax.random.uniform(k2, (emb_dim, latent_dim, 3), jnp.float32, -bnd2, bnd2)
    w1 = jnp.transpose(W1, (2, 1, 0))   # (3, emb, lat)
    w2 = jnp.transpose(W2, (2, 1, 0))   # (3, lat, emb)
    g1 = jnp.ones((1, latent_dim), jnp.float32)
    b1 = jnp.zeros((1, latent_dim), jnp.float32)
    g2 = jnp.ones((1, emb_dim), jnp.float32)
    b2 = jnp.zeros((1, emb_dim), jnp.float32)
    return w1, g1, b1, w2, g2, b2


def reference(x_ncl, w1, g1, b1, w2, g2, b2):
    """Pure-JAX reference: same math (bf16 conv operands, f32 accumulation & BN)."""
    x = jnp.transpose(x_ncl, (0, 2, 1)).astype(jnp.float32)

    def conv(h, w):
        L = h.shape[1]
        hp = jnp.pad(h, ((0, 0), (1, 1), (0, 0))).astype(jnp.bfloat16)
        wb = w.astype(jnp.bfloat16)
        return sum(jnp.einsum('blc,cf->blf', hp[:, k:k + L, :], wb[k],
                              preferred_element_type=jnp.float32) for k in range(3))

    def bn_lrelu(h, g, bt):
        m = jnp.mean(h, axis=(0, 1), keepdims=True)
        v = jnp.mean((h - m) ** 2, axis=(0, 1), keepdims=True)
        y = (h - m) * jax.lax.rsqrt(v + EPS) * g.reshape(1, 1, -1) + bt.reshape(1, 1, -1)
        return jnp.where(y > 0, y, NEG_SLOPE * y)

    h1 = bn_lrelu(conv(x, w1), g1, b1)
    h2 = bn_lrelu(conv(h1, w2), g2, b2)
    return jnp.transpose(h2, (0, 2, 1))


if __name__ == "__main__":
    EMB_DIM, LATENT_DIM = 32, 64
    B, L = 2, 16

    key = jax.random.PRNGKey(0)
    kx, kp = jax.random.split(key)
    x = jax.random.normal(kx, (B, EMB_DIM, L), jnp.float32)    # NCL, like PyTorch
    params = init_params(kp, EMB_DIM, LATENT_DIM)

    out = jax.jit(predictor_forward)(x, *params)
    out = jax.block_until_ready(out)

    ref = reference(x, *params)
    assert out.shape == (B, EMB_DIM, L)
    assert jnp.allclose(out, ref, atol=1e-2, rtol=1e-2), "kernel does not match reference"
    print("KERNEL_OK")
</pallas_src>

<mosaic_0001>
module attributes {stable_mosaic.version = 11 : i64} {
  func.func @predictor_kernel(%arg0: memref<32x128xbf16, #tpu.memory_space<vmem>>, %arg1: memref<384x128xbf16, #tpu.memory_space<vmem>>, %arg2: memref<1x128xf32, #tpu.memory_space<vmem>>, %arg3: memref<1x128xf32, #tpu.memory_space<vmem>>, %arg4: memref<384x128xbf16, #tpu.memory_space<vmem>>, %arg5: memref<1x128xf32, #tpu.memory_space<vmem>>, %arg6: memref<1x128xf32, #tpu.memory_space<vmem>>, %arg7: memref<32x128xf32, #tpu.memory_space<vmem>>, %arg8: memref<34x128xbf16, #tpu.memory_space<vmem>>, %arg9: memref<34x128xbf16, #tpu.memory_space<vmem>>) attributes {dimension_semantics = [], scalar_prefetch = 0 : i64, scratch_operands = 2 : i64, tpu.core_type = #tpu.core_type<tc>} {
    %0 = tpu.iota {dimensions = array<i32: 0>} : vector<32x1xi32>
    %c16_i32 = arith.constant 16 : i32
    %c0_i32 = arith.constant 0 : i32
    %1 = arith.cmpi eq, %c16_i32, %c0_i32 : i32
    %c1_i32 = arith.constant 1 : i32
    %2 = arith.select %1, %c1_i32, %c16_i32 : i32
    %3 = vector.broadcast %2 : i32 to vector<32x1xi32>
    %4 = arith.remsi %0, %3 : vector<32x1xi32>
    %c0_i32_0 = arith.constant 0 : i32
    %5 = vector.broadcast %c0_i32_0 : i32 to vector<32x1xi32>
    %6 = arith.cmpi ne, %4, %5 : vector<32x1xi32>
    %c0_i32_1 = arith.constant 0 : i32
    %7 = vector.broadcast %c0_i32_1 : i32 to vector<32x1xi32>
    %8 = arith.cmpi slt, %4, %7 : vector<32x1xi32>
    %c0_i32_2 = arith.constant 0 : i32
    %9 = arith.cmpi slt, %2, %c0_i32_2 : i32
    %10 = vector.broadcast %9 : i1 to vector<32x1xi1>
    %11 = vector.broadcast %10 : vector<32x1xi1> to vector<32x1xi1>
    %12 = arith.xori %8, %11 : vector<32x1xi1>
    %13 = arith.andi %12, %6 : vector<32x1xi1>
    %14 = vector.broadcast %2 : i32 to vector<32x1xi32>
    %15 = arith.addi %4, %14 : vector<32x1xi32>
    %16 = arith.select %13, %15, %4 : vector<32x1xi1>, vector<32x1xi32>
    %c0_i32_3 = arith.constant 0 : i32
    %17 = vector.broadcast %c0_i32_3 : i32 to vector<32x1xi32>
    %18 = arith.cmpi eq, %16, %17 : vector<32x1xi32>
    %c15_i32 = arith.constant 15 : i32
    %19 = vector.broadcast %c15_i32 : i32 to vector<32x1xi32>
    %20 = arith.cmpi eq, %16, %19 : vector<32x1xi32>
    %c0 = arith.constant 0 : index
    %c0_4 = arith.constant 0 : index
    %21 = vector.load %arg0[%c0, %c0_4] : memref<32x128xbf16, #tpu.memory_space<vmem>>, vector<32x128xbf16>
    %cst = arith.constant 0.000000e+00 : bf16
    %22 = vector.broadcast %cst : bf16 to vector<1x128xbf16>
    %c0_5 = arith.constant 0 : index
    %c0_6 = arith.constant 0 : index
    %23 = vector.load %arg8[%c0_5, %c0_6] : memref<34x128xbf16, #tpu.memory_space<vmem>>, vector<1x128xbf16>
    tpu.vector_store %arg8[%c0_5, %c0_6], %22 {strides = array<i32>} : memref<34x128xbf16, #tpu.memory_space<vmem>>, vector<1x128xbf16>,
    %c33 = arith.constant 33 : index
    %c0_7 = arith.constant 0 : index
    %24 = vector.load %arg8[%c33, %c0_7] : memref<34x128xbf16, #tpu.memory_space<vmem>>, vector<1x128xbf16>
    tpu.vector_store %arg8[%c33, %c0_7], %22 {strides = array<i32>} : memref<34x128xbf16, #tpu.memory_space<vmem>>, vector<1x128xbf16>,
    %c1 = arith.constant 1 : index
    %c0_8 = arith.constant 0 : index
    %25 = vector.load %arg8[%c1, %c0_8] : memref<34x128xbf16, #tpu.memory_space<vmem>>, vector<32x128xbf16>
    tpu.vector_store %arg8[%c1, %c0_8], %21 {strides = array<i32>} : memref<34x128xbf16, #tpu.memory_space<vmem>>, vector<32x128xbf16>,
    %c0_9 = arith.constant 0 : index
    %c0_10 = arith.constant 0 : index
    %26 = vector.load %arg8[%c0_9, %c0_10] : memref<34x128xbf16, #tpu.memory_space<vmem>>, vector<32x128xbf16>
    %c2 = arith.constant 2 : index
    %c0_11 = arith.constant 0 : index
    %27 = vector.load %arg8[%c2, %c0_11] : memref<34x128xbf16, #tpu.memory_space<vmem>>, vector<32x128xbf16>
    %cst_12 = arith.constant 0.000000e+00 : f32
    %28 = arith.truncf %cst_12 : f32 to bf16
    %29 = vector.shape_cast %18 : vector<32x1xi1> to vector<32x1xi1>
    %30 = vector.broadcast %29 : vector<32x1xi1> to vector<32x128xi1>
    %31 = vector.broadcast %28 : bf16 to vector<32x128xbf16>
    %32 = arith.select %30, %31, %26 : vector<32x128xi1>, vector<32x128xbf16>
    %cst_13 = arith.constant 0.000000e+00 : f32
    %33 = arith.truncf %cst_13 : f32 to bf16
    %34 = vector.shape_cast %20 : vector<32x1xi1> to vector<32x1xi1>
    %35 = vector.broadcast %34 : vector<32x1xi1> to vector<32x128xi1>
    %36 = vector.broadcast %33 : bf16 to vector<32x128xbf16>
    %37 = arith.select %35, %36, %27 : vector<32x128xi1>, vector<32x128xbf16>
    %38 = tpu.concatenate %32, %21, %37 in 1 : vector<32x128xbf16>, vector<32x128xbf16>, vector<32x128xbf16> -> vector<32x384xbf16>
    %c0_14 = arith.constant 0 : index
    %c0_15 = arith.constant 0 : index
    %39 = vector.load %arg1[%c0_14, %c0_15] : memref<384x128xbf16, #tpu.memory_space<vmem>>, vector<384x128xbf16>
    %cst_16 = arith.constant dense<0.000000e+00> : vector<32x128xf32>
    %40 = tpu.matmul %38, %39, %cst_16 {dimension_numbers = #tpu.dot_dimension_numbers<[1], [0], [0], [1], [0, 0, 1, 1], [], []>} : vector<32x384xbf16>, vector<384x128xbf16>, vector<32x128xf32> -> vector<32x128xf32>
    %cst_17 = arith.constant dense<0.000000e+00> : vector<128xf32>
    %41 = vector.multi_reduction <add>, %40, %cst_17 [0] : vector<32x128xf32> to vector<128xf32>
    %42 = vector.shape_cast %41 : vector<128xf32> to vector<1x128xf32>
    %cst_18 = arith.constant 3.125000e-02 : f32
    %43 = vector.broadcast %cst_18 : f32 to vector<1x128xf32>
    %44 = arith.mulf %42, %43 : vector<1x128xf32>
    %45 = vector.broadcast %44 : vector<1x128xf32> to vector<32x128xf32>
    %46 = arith.subf %40, %45 : vector<32x128xf32>
    %47 = arith.mulf %46, %46 : vector<32x128xf32>
    %cst_19 = arith.constant dense<0.000000e+00> : vector<128xf32>
    %48 = vector.multi_reduction <add>, %47, %cst_19 [0] : vector<32x128xf32> to vector<128xf32>
    %49 = vector.shape_cast %48 : vector<128xf32> to vector<1x128xf32>
    %cst_20 = arith.constant 3.125000e-02 : f32
    %50 = vector.broadcast %cst_20 : f32 to vector<1x128xf32>
    %51 = arith.mulf %49, %50 : vector<1x128xf32>
    %c0_21 = arith.constant 0 : index
    %c0_22 = arith.constant 0 : index
    %52 = vector.load %arg2[%c0_21, %c0_22] : memref<1x128xf32, #tpu.memory_space<vmem>>, vector<1x128xf32>
    %cst_23 = arith.constant 9.99999974E-6 : f32
    %53 = vector.broadcast %cst_23 : f32 to vector<1x128xf32>
    %54 = arith.addf %51, %53 : vector<1x128xf32>
    %55 = math.rsqrt %54 : vector<1x128xf32>
    %56 = arith.mulf %52, %55 : vector<1x128xf32>
    %57 = vector.broadcast %56 : vector<1x128xf32> to vector<32x128xf32>
    %58 = arith.mulf %46, %57 : vector<32x128xf32>
    %c0_24 = arith.constant 0 : index
    %c0_25 = arith.constant 0 : index
    %59 = vector.load %arg3[%c0_24, %c0_25] : memref<1x128xf32, #tpu.memory_space<vmem>>, vector<1x128xf32>
    %60 = vector.broadcast %59 : vector<1x128xf32> to vector<32x128xf32>
    %61 = arith.addf %58, %60 : vector<32x128xf32>
    %cst_26 = arith.constant 0.000000e+00 : f32
    %62 = vector.broadcast %cst_26 : f32 to vector<32x128xf32>
    %63 = arith.cmpf ogt, %61, %62 : vector<32x128xf32>
    %cst_27 = arith.constant 1.000000e-01 : f32
    %64 = vector.broadcast %cst_27 : f32 to vector<32x128xf32>
    %65 = arith.mulf %64, %61 : vector<32x128xf32>
    %66 = arith.select %63, %61, %65 : vector<32x128xi1>, vector<32x128xf32>
    %67 = arith.truncf %66 : vector<32x128xf32> to vector<32x128xbf16>
    %cst_28 = arith.constant 0.000000e+00 : bf16
    %68 = vector.broadcast %cst_28 : bf16 to vector<1x128xbf16>
    %c0_29 = arith.constant 0 : index
    %c0_30 = arith.constant 0 : index
    %69 = vector.load %arg9[%c0_29, %c0_30] : memref<34x128xbf16, #tpu.memory_space<vmem>>, vector<1x128xbf16>
    tpu.vector_store %arg9[%c0_29, %c0_30], %68 {strides = array<i32>} : memref<34x128xbf16, #tpu.memory_space<vmem>>, vector<1x128xbf16>,
    %c33_31 = arith.constant 33 : index
    %c0_32 = arith.constant 0 : index
    %70 = vector.load %arg9[%c33_31, %c0_32] : memref<34x128xbf16, #tpu.memory_space<vmem>>, vector<1x128xbf16>
    tpu.vector_store %arg9[%c33_31, %c0_32], %68 {strides = array<i32>} : memref<34x128xbf16, #tpu.memory_space<vmem>>, vector<1x128xbf16>,
    %c1_33 = arith.constant 1 : index
    %c0_34 = arith.constant 0 : index
    %71 = vector.load %arg9[%c1_33, %c0_34] : memref<34x128xbf16, #tpu.memory_space<vmem>>, vector<32x128xbf16>
    tpu.vector_store %arg9[%c1_33, %c0_34], %67 {strides = array<i32>} : memref<34x128xbf16, #tpu.memory_space<vmem>>, vector<32x128xbf16>,
    %c0_35 = arith.constant 0 : index
    %c0_36 = arith.constant 0 : index
    %72 = vector.load %arg9[%c0_35, %c0_36] : memref<34x128xbf16, #tpu.memory_space<vmem>>, vector<32x128xbf16>
    %c2_37 = arith.constant 2 : index
    %c0_38 = arith.constant 0 : index
    %73 = vector.load %arg9[%c2_37, %c0_38] : memref<34x128xbf16, #tpu.memory_space<vmem>>, vector<32x128xbf16>
    %cst_39 = arith.constant 0.000000e+00 : f32
    %74 = arith.truncf %cst_39 : f32 to bf16
    %75 = vector.shape_cast %18 : vector<32x1xi1> to vector<32x1xi1>
    %76 = vector.broadcast %75 : vector<32x1xi1> to vector<32x128xi1>
    %77 = vector.broadcast %74 : bf16 to vector<32x128xbf16>
    %78 = arith.select %76, %77, %72 : vector<32x128xi1>, vector<32x128xbf16>
    %cst_40 = arith.constant 0.000000e+00 : f32
    %79 = arith.truncf %cst_40 : f32 to bf16
    %80 = vector.shape_cast %20 : vector<32x1xi1> to vector<32x1xi1>
    %81 = vector.broadcast %80 : vector<32x1xi1> to vector<32x128xi1>
    %82 = vector.broadcast %79 : bf16 to vector<32x128xbf16>
    %83 = arith.select %81, %82, %73 : vector<32x128xi1>, vector<32x128xbf16>
    %84 = tpu.concatenate %78, %67, %83 in 1 : vector<32x128xbf16>, vector<32x128xbf16>, vector<32x128xbf16> -> vector<32x384xbf16>
    %c0_41 = arith.constant 0 : index
    %c0_42 = arith.constant 0 : index
    %85 = vector.load %arg4[%c0_41, %c0_42] : memref<384x128xbf16, #tpu.memory_space<vmem>>, vector<384x128xbf16>
    %cst_43 = arith.constant dense<0.000000e+00> : vector<32x128xf32>
    %86 = tpu.matmul %84, %85, %cst_43 {dimension_numbers = #tpu.dot_dimension_numbers<[1], [0], [0], [1], [0, 0, 1, 1], [], []>} : vector<32x384xbf16>, vector<384x128xbf16>, vector<32x128xf32> -> vector<32x128xf32>
    %cst_44 = arith.constant dense<0.000000e+00> : vector<128xf32>
    %87 = vector.multi_reduction <add>, %86, %cst_44 [0] : vector<32x128xf32> to vector<128xf32>
    %88 = vector.shape_cast %87 : vector<128xf32> to vector<1x128xf32>
    %cst_45 = arith.constant 3.125000e-02 : f32
    %89 = vector.broadcast %cst_45 : f32 to vector<1x128xf32>
    %90 = arith.mulf %88, %89 : vector<1x128xf32>
    %91 = vector.broadcast %90 : vector<1x128xf32> to vector<32x128xf32>
    %92 = arith.subf %86, %91 : vector<32x128xf32>
    %93 = arith.mulf %92, %92 : vector<32x128xf32>
    %cst_46 = arith.constant dense<0.000000e+00> : vector<128xf32>
    %94 = vector.multi_reduction <add>, %93, %cst_46 [0] : vector<32x128xf32> to vector<128xf32>
    %95 = vector.shape_cast %94 : vector<128xf32> to vector<1x128xf32>
    %cst_47 = arith.constant 3.125000e-02 : f32
    %96 = vector.broadcast %cst_47 : f32 to vector<1x128xf32>
    %97 = arith.mulf %95, %96 : vector<1x128xf32>
    %c0_48 = arith.constant 0 : index
    %c0_49 = arith.constant 0 : index
    %98 = vector.load %arg5[%c0_48, %c0_49] : memref<1x128xf32, #tpu.memory_space<vmem>>, vector<1x128xf32>
    %cst_50 = arith.constant 9.99999974E-6 : f32
    %99 = vector.broadcast %cst_50 : f32 to vector<1x128xf32>
    %100 = arith.addf %97, %99 : vector<1x128xf32>
    %101 = math.rsqrt %100 : vector<1x128xf32>
    %102 = arith.mulf %98, %101 : vector<1x128xf32>
    %103 = vector.broadcast %102 : vector<1x128xf32> to vector<32x128xf32>
    %104 = arith.mulf %92, %103 : vector<32x128xf32>
    %c0_51 = arith.constant 0 : index
    %c0_52 = arith.constant 0 : index
    %105 = vector.load %arg6[%c0_51, %c0_52] : memref<1x128xf32, #tpu.memory_space<vmem>>, vector<1x128xf32>
    %106 = vector.broadcast %105 : vector<1x128xf32> to vector<32x128xf32>
    %107 = arith.addf %104, %106 : vector<32x128xf32>
    %cst_53 = arith.constant 0.000000e+00 : f32
    %108 = vector.broadcast %cst_53 : f32 to vector<32x128xf32>
    %109 = arith.cmpf ogt, %107, %108 : vector<32x128xf32>
    %cst_54 = arith.constant 1.000000e-01 : f32
    %110 = vector.broadcast %cst_54 : f32 to vector<32x128xf32>
    %111 = arith.mulf %110, %107 : vector<32x128xf32>
    %112 = arith.select %109, %107, %111 : vector<32x128xi1>, vector<32x128xf32>
    %c0_55 = arith.constant 0 : index
    %c0_56 = arith.constant 0 : index
    %113 = vector.load %arg7[%c0_55, %c0_56] : memref<32x128xf32, #tpu.memory_space<vmem>>, vector<32x128xf32>
    tpu.vector_store %arg7[%c0_55, %c0_56], %112 {strides = array<i32>} : memref<32x128xf32, #tpu.memory_space<vmem>>, vector<32x128xf32>,
    return
  }
}

</mosaic_0001>

<bundles_post_ra>
// kernel: predictor_forward.1
= control target key start
LH: loop header
LB: loop body
LE: loop exit
PB: predicated region body
PF: predicated region fallthrough
CT: control target
= control target key end

     0   :  { %v29_v7 = vlaneseq  ;;  %vm94_vm0 = vcmask 1040384   ;;  %vm95_vm1 = vsmask.f32 256  ;;  %vm147_vm2 = vcmask 1043456   ;;  %v97_v26 = vld [vmem:[#allocation2] sm:$0x1]  ;;  %s1748_s1 = inlined_call_operand.vmem [shape: bf16[384,128], index: 1, kind: input, shape index: {}]   ;;  %s1749_s0 = inlined_call_operand.vmem [shape: bf16[32,128], index: 0, kind: input, shape index: {}]   ;;  %s1750_s4 = inlined_call_operand.vmem [shape: bf16[384,128], index: 4, kind: input, shape index: {}]   ;;  %s1751_s2 = inlined_call_operand.vmem [shape: f32[1,128], index: 2, kind: input, shape index: {}]   ;;  %s1752_s3 = inlined_call_operand.vmem [shape: f32[1,128], index: 3, kind: input, shape index: {}]   ;;  %s1753_s5 = inlined_call_operand.vmem [shape: f32[1,128], index: 5, kind: input, shape index: {}]   ;;  %s1754_s6 = inlined_call_operand.vmem [shape: f32[1,128], index: 6, kind: input, shape index: {}]   ;;  %s1755_s7 = inlined_call_operand.vmem [shape: f32[32,128], index: 7, kind: output, shape index: {}]  }
   0x1   :  { %v1284_v0 = vld [vmem:[%s1748_s1 + $0x40] sm:$0xff]   ;;  %v1287_v3 = vld [vmem:[%s1748_s1 + $0x48] sm:$0xff]   ;;  %v1290_v6 = vld [vmem:[%s1748_s1 + $0x50] sm:$0xff]   ;;  %vm100_vm6 = vsmask.f32 7938  ;;  %vm196_vm11 = vcmask 1044484  }
   0x2   :  { %v1285_v1 = vld [vmem:[%s1748_s1] sm:$0xff]   ;;  %1166 = vmatprep.subr.bf16.mxu0 %v1284_v0  ;;  %v1288_v4 = vld [vmem:[%s1748_s1 + $0x8] sm:$0xff]   ;;  %v1291_v8 = vld [vmem:[%s1748_s1 + $0x10] sm:$0xff]   ;;  %v1413_v12 = vshrl.u32 %v29_v7, 7  ;;  %vm105_vm8 = vsmask.f32 4368 }
   0x3   :  { %v1286_v2 = vld [vmem:[%s1748_s1 + $0x80] sm:$0xff]   ;;  %1167 = vmatpush3.bf16.msra.mxu0 %v1285_v1  ;;  %v1289_v5 = vld [vmem:[%s1748_s1 + $0x88] sm:$0xff]   ;;  %v1292_v9 = vld [vmem:[%s1748_s1 + $0x90] sm:$0xff]   ;;  %vm1338_vm12 = vmmov 0  }
   0x4   :  { %1242 = vmatprep.subr.bf16.mxu1 %v1286_v2  ;;  %1168 = vmatprep.subr.bf16.mxu0 %v1287_v3  ;;  %v1293_v10 = vld [vmem:[%s1748_s1 + $0x58] sm:$0xff]   ;;  %v1296_v14 = vld [vmem:[%s1748_s1 + $0x60] sm:$0xff]   ;;  %v31_v16 = vadd.s32 8, %v1413_v12  ;;  %v33_v18 = vadd.s32 24, %v1413_v12  ;;  %v1299_v19 = vld [vmem:[%s1748_s1 + $0x68] sm:$0xff]   ;;  %v32_v62 = vadd.s32 16, %v1413_v12 }
   0x5   :  { %1243 = vmatpush3.bf16.msra.mxu1 %v1286_v2  ;;  %v1294_v11 = vld [vmem:[%s1748_s1 + $0x18] sm:$0xff]   ;;  %v1298_v15 = vld [vmem:[%s1748_s1 + $0xa0] sm:$0xff]   ;;  %v1301_v20 = vld [vmem:[%s1748_s1 + $0xa8] sm:$0xff]  }
   0x6   :  { %1244 = vmatprep.subr.bf16.mxu1 %v1289_v5  ;;  %v1295_v13 = vld [vmem:[%s1748_s1 + $0x98] sm:$0xff]   ;;  %v1297_v17 = vld [vmem:[%s1748_s1 + $0x20] sm:$0xff]   ;;  %v45_v21 = vand.u32 15, %v31_v16  ;;  %v1300_v22 = vld [vmem:[%s1748_s1 + $0x28] sm:$0xff]   ;;  %v59_v23 = vand.u32 15, %v33_v18 }
   0x7   :  { %1169 = vmatpush3.bf16.msra.mxu0 %v1288_v4  ;;  %v1302_v24 = vld [vmem:[%s1748_s1 + $0x70] sm:$0xff]   ;;  %v1305_v29 = vld [vmem:[%s1748_s1 + $0x78] sm:$0xff]   ;;  %v90_v31 = vld [vmem:[%s1749_s0] sm:$0xf] }
   0x8   :  { %1170 = vmatprep.subr.bf16.mxu0 %v1290_v6  ;;  %v1303_v25 = vld [vmem:[%s1748_s1 + $0x30] sm:$0xff]   ;;  %vm1447_vm3 = vcmp.eq.s32.totalorder %v45_v21, 15  ;;  %vm1454_vm4 = vcmp.eq.s32.totalorder %v59_v23, 15  ;;  %v91_v32 = vld [vmem:[%s1749_s0 + $0x4] sm:$0xf]  ;;  %v1306_v34 = vld [vmem:[%s1748_s1 + $0x38] sm:$0xff]  }
   0x9   :  { %1245 = vmatpush3.bf16.msra.mxu1 %v1289_v5  ;;  %v1304_v27 = vld [vmem:[%s1748_s1 + $0xb0] sm:$0xff]   ;;  %v1467_v33 = vld [vmem:[%s1749_s0 + $0x8] sm:$0xf]  ;;  %v1475_v35 = vld [vmem:[%s1749_s0 + $0xc] sm:$0xf]  ;;  %v1098_v38 = vcombine.low %v90_v31, %v91_v32  ;;  %v108_v42 = vshrl.u32 %v90_v31, 16 }
   0xa   :  { %1246 = vmatprep.subr.bf16.mxu1 %v1292_v9  ;;  %vm1479_vm5 = vmand %vm94_vm0, %vm95_vm1  ;;  %v102_v37 = vld [vmem:[#allocation2 + $0x10] sm:$0x1]  ;;  %v1307_v39 = vld [vmem:[%s1748_s1 + $0xb8] sm:$0xff]   ;;  %v111_v43 = vshll.u32 %v90_v31, 16  ;;  %v116_v45 = vshrl.u32 %v91_v32, 16  ;;  %v119_v46 = vshll.u32 %v91_v32, 16 }
   0xb   :  { %1171 = vmatpush3.bf16.msra.mxu0 %v1291_v8  ;;  %v98_v40 = vsel %vm1479_vm5, 0, %v97_v26  ;;  %vm1490_vm7 = vmand %vm94_vm0, %vm100_vm6  ;;  %v125_v47 = vshrl.u32 %v1467_v33, 16  ;;  %488 = vmatprep.mubr.bf16.mxu0 %v1098_v38  ;;  %v624_v48 = vld [vmem:[#allocation3 + $0x10] sm:$0x1]  ;;  %v110_v50 = vrot.slane %v108_v42, 7  ;;  %v128_v51 = vshll.u32 %v1467_v33, 16 }
   0xc   :  { %1172 = vmatprep.subr.bf16.mxu0 %v1293_v10  ;;  %99 = vst [vmem:[#allocation2] sm:$0x1] %v98_v40  ;;  %v103_v44 = vsel %vm1490_vm7, 0, %v102_v37  ;;  %vm1498_vm9 = vmor %vm95_vm1, %vm105_vm8  ;;  %v134_v52 = vshrl.u32 %v1475_v35, 16  ;;  %v137_v53 = vshll.u32 %v1475_v35, 16  ;;  %v118_v54 = vrot.slane %v116_v45, 7 }
   0xd   :  { %1247 = vmatpush3.bf16.msra.mxu1 %v1292_v9  ;;  %104 = vst [vmem:[#allocation2 + $0x10] sm:$0x1] %v103_v44  ;;  %v127_v55 = vrot.slane %v125_v47, 7  ;;  %vm1507_vm10 = vmand %vm147_vm2, %vm100_vm6  ;;  %v625_v57 = vsel %vm1490_vm7, 0, %v624_v48  ;;  %v113_v58 = vor.u32 %v111_v43, %v110_v50  ;;  %v114_v59 = vrot.slane %v110_v50, 4  ;;  %v1324_v16 = vld [vmem:[%s1750_s4 + $0x68] sm:$0xff]  }
   0xe   :  { %1248 = vmatprep.subr.bf16.mxu1 %v1295_v13  ;;  %v136_v60 = vrot.slane %v134_v52, 7  ;;  %626 = vst [vmem:[#allocation3 + $0x10] sm:$0x1] %v625_v57  ;;  %vm1513_vm13 = vmpackc.low %vm1338_vm12, %vm1338_vm12  ;;  %v121_v63 = vor.u32 %v119_v46, %v118_v54  ;;  %v123_v0 = vrot.slane %v118_v54, 4  ;;  %v1339_v5 = vmov 0  }
   0xf   :  { %1173 = vmatpush3.bf16.msra.mxu0 %v1294_v11  ;;  %v130_v1 = vor.u32 %v128_v51, %v127_v55  ;;  %v132_v2 = vrot.slane %v127_v55, 4  ;;  %vm189_vm14 = vmpackc.low %vm1447_vm3, %vm1447_vm3  ;;  %v192_v6 = vsel %vm1513_vm13, 65537, %v1339_v5  ;;  %v52_v26 = vand.u32 15, %v32_v62  ;;  %v1310_v62 = vld [vmem:[%s1750_s4 + $0x40] sm:$0xff]  }
  0x10   :  { %1174 = vmatprep.subr.bf16.mxu0 %v1296_v14  ;;  %v139_v3 = vor.u32 %v137_v53, %v136_v60  ;;  %v141_v4 = vrot.slane %v136_v60, 4  ;;  %vm191_vm15 = vmpackc.low %vm1454_vm4, %vm1454_vm4  ;;  %v193_v7 = vsel %vm189_vm14, 65537, %v1339_v5  ;;  %v122_v8 = vsel %vm1498_vm9, %v114_v59, %v121_v63  ;;  %v1311_v63 = vld [vmem:[%s1750_s4] sm:$0xff]  }
  0x11   :  { %1249 = vmatpush3.bf16.msra.mxu1 %v1295_v13  ;;  %v131_v9 = vsel %vm1498_vm9, %v123_v0, %v130_v1  ;;  %v195_v10 = vsel %vm191_vm15, 65537, %v1339_v5  ;;  %v1530_v11 = vrot.slane %v192_v6, 7  ;;  %152 = vst [vmem:[#allocation2 + $0x4] sm:$0xf] %v122_v8  ;;  %vm1537_vm1 = vmor %vm94_vm0, %vm196_vm11  ;;  %vm1573_vm8 = vcmp.eq.s32.totalorder %v52_v26, 0  ;;  %v1312_v0 = vld [vmem:[%s1750_s4 + $0x48] sm:$0xff]  }
  0x12   :  { %1250 = vmatprep.subr.bf16.mxu1 %v1298_v15  ;;  %v140_v13 = vsel %vm1498_vm9, %v132_v2, %v139_v3  ;;  %153 = vst [vmem:[#allocation2 + $0x8] sm:$0xf] %v131_v9  ;;  %v206_v18 = vrot.slane %v195_v10, 7  ;;  %v1099_v48 = vcombine.low %v1467_v33, %v1475_v35  ;;  %vm1757_vm12 = vmpackc.low %vm1573_vm8, %vm1573_vm8  ;;  %vm1756_vm14 = vcmask 1046528   ;;  %v1313_v1 = vld [vmem:[%s1750_s4 + $0x80] sm:$0xff]   ;;  %v1314_v2 = vld [vmem:[%s1750_s4 + $0x8] sm:$0xff]  }
  0x13   :  { %1175 = vmatpush3.bf16.msra.mxu0 %v1297_v17  ;;  %v149_v14 = vld [vmem:[#allocation2] sm:$0xf]  ;;  %v200_v17 = vrot.slane %v193_v7, 7  ;;  %154 = vst [vmem:[#allocation2 + $0xc] sm:$0xf] %v140_v13  ;;  %v199_v21 = vrot.slane %v1530_v11, 4 }
  0x14   :  { %1176 = vmatprep.subr.bf16.mxu0 %v1299_v19  ;;  %v150_v19 = vsel %vm1507_vm10, %v113_v58, %v149_v14  ;;  %vm209_vm7 = vcmp.ne.s16.totalorder %v1530_v11, 0  ;;  %v1315_v3 = vld [vmem:[%s1750_s4 + $0x50] sm:$0xff]   ;;  %v1318_v6 = vld [vmem:[%s1750_s4 + $0x58] sm:$0xff]   ;;  %v1321_v13 = vld [vmem:[%s1750_s4 + $0x60] sm:$0xff]  }
  0x15   :  { %1251 = vmatpush3.bf16.msra.mxu1 %v1298_v15  ;;  %v38_v15 = vand.u32 15, %v1413_v12  ;;  %151 = vst [vmem:[#allocation2] sm:$0xf] %v150_v19  ;;  %v202_v23 = vrot.slane %v200_v17, 4  ;;  %v1317_v5 = vld [vmem:[%s1750_s4 + $0x10] sm:$0xff]   ;;  %v1320_v8 = vld [vmem:[%s1750_s4 + $0x18] sm:$0xff]  }
  0x16   :  { %1252 = vmatprep.subr.bf16.mxu1 %v1301_v20  ;;  %v1319_v7 = vld [vmem:[%s1750_s4 + $0x90] sm:$0xff]   ;;  %v1322_v14 = vld [vmem:[%s1750_s4 + $0x98] sm:$0xff]  }
  0x17   :  { %1177 = vmatpush3.bf16.msra.mxu0 %v1300_v22  ;;  %vm1554_vm0 = vcmp.eq.s32.totalorder %v38_v15, 0  ;;  %v204_v28 = vsel %vm1537_vm1, %v202_v23, %v1530_v11  ;;  %v621_v9 = vld [vmem:[#allocation3] sm:$0x1]  ;;  %v1323_v15 = vld [vmem:[%s1750_s4 + $0x20] sm:$0xff]   ;;  %v1332_v26 = vld [vmem:[%s1750_s4 + $0x38] sm:$0xff]  }
  0x18   :  { %1178 = vmatprep.subr.bf16.mxu0 %v1302_v24  ;;  %v1548_v24 = vsel %vm1537_vm1, %v199_v21, %v200_v17  ;;  %vm1564_vm3 = vcmp.ne.s16.totalorder %v204_v28, 0  ;;  %v159_v31 = vld [vmem:[#allocation2 + $0x4] sm:$0xf]  ;;  %vm172_vm6 = vmpackc.low %vm1554_vm0, %vm1554_vm0  ;;  %v622_v10 = vsel %vm1479_vm5, 0, %v621_v9  ;;  %v1327_v19 = vld [vmem:[%s1750_s4 + $0x70] sm:$0xff]  }
  0x19   :  { %1253 = vmatpush3.bf16.msra.mxu1 %v1301_v20  ;;  %v155_v20 = vld [vmem:[#allocation2 + $0x10] sm:$0x1]  ;;  %vm210_vm2 = vcmp.ne.s16.totalorder %v1548_v24, 0  ;;  %v160_v32 = vld [vmem:[#allocation2 + $0x8] sm:$0xf]  ;;  %v177_v37 = vsel %vm1513_vm13, 0, %v159_v31 }
  0x1a   :  { %1254 = vmatprep.subr.bf16.mxu1 %v1304_v27  ;;  %v156_v22 = vsel %vm1479_vm5, %v141_v4, %v155_v20  ;;  %v161_v38 = vld [vmem:[#allocation2 + $0xc] sm:$0xf]  ;;  %v216_v40 = vsel %vm1564_vm3, 0, %v160_v32  ;;  %v178_v33 = vsel %vm1757_vm12, 0, %v160_v32  ;;  %623 = vst [vmem:[#allocation3] sm:$0x1] %v622_v10 }
  0x1b   :  { %1179 = vmatpush3.bf16.msra.mxu0 %v1303_v25  ;;  %157 = vst [vmem:[#allocation2 + $0x10] sm:$0x1] %v156_v22  ;;  %v1552_v25 = vsel %vm1537_vm1, %v199_v21, %v206_v18  ;;  %v179_v35 = vsel %vm1513_vm13, 0, %v161_v38  ;;  %v1316_v4 = vld [vmem:[%s1750_s4 + $0x88] sm:$0xff]   ;;  %v1325_v17 = vld [vmem:[%s1750_s4 + $0xa0] sm:$0xff]   ;;  %v1329_v21 = vld [vmem:[%s1750_s4 + $0x30] sm:$0xff]  }
  0x1c   :  { %1180 = vmatprep.subr.bf16.mxu0 %v1305_v29  ;;  %v1561_v29 = vrot.slane %v206_v18, 4  ;;  %vm212_vm4 = vcmp.ne.s16.totalorder %v1552_v25, 0  ;;  %v158_v41 = vld [vmem:[#allocation2] sm:$0xf]  ;;  %v1097_v60 = vcombine.low %v178_v33, %v179_v35  ;;  %v1326_v18 = vld [vmem:[%s1750_s4 + $0x28] sm:$0xff]   ;;  %v1330_v22 = vld [vmem:[%s1750_s4 + $0x78] sm:$0xff]  }
  0x1d   :  { %1255 = vmatpush3.bf16.msra.mxu1 %v1304_v27  ;;  %v162_v42 = vld [vmem:[#allocation2] sm:$0xe]  ;;  %v217_v43 = vsel %vm212_vm4, 0, %v161_v38  ;;  %v176_v44 = vsel %vm172_vm6, 0, %v158_v41  ;;  %v1328_v20 = vld [vmem:[%s1750_s4 + $0xa8] sm:$0xff]   ;;  %v1331_v23 = vld [vmem:[%s1750_s4 + $0xb0] sm:$0xff]  }
  0x1e   :  { %1256 = vmatprep.subr.bf16.mxu1 %v1307_v39  ;;  %vm213_vm11 = vcmp.ne.s16.totalorder %v1561_v29, 0  ;;  %v214_v45 = vsel %vm209_vm7, 0, %v162_v42  ;;  %v1101_v46 = vcombine.low %v216_v40, %v217_v43  ;;  %v1096_v50 = vcombine.low %v176_v44, %v177_v37  ;;  %v1333_v28 = vld [vmem:[%s1750_s4 + $0xb8] sm:$0xff]  }
  0x1f   :  { %1181 = vmatpush3.bf16.msra.mxu0 %v1306_v34 }
  0x20   :  { %v258_v53 = vrot.slane %v1101_v46, 1  ;;  %1204 = vmatprep.subr.bf16.mxu0 %v1310_v62 }
  0x21   :  { %1257 = vmatpush3.bf16.msra.mxu1 %v1307_v39  ;;  %v215_v39 = vsel %vm210_vm2, 0, %v159_v31 }
  0x22   :  { %v163_v47 = vld [vmem:[#allocation2 + $0x10] sm:$0x1]  ;;  %v1100_v51 = vcombine.low %v214_v45, %v215_v39  ;;  %489 = vmatmul.mubr.bf16.vlgmr.msra.gmra.mrb[0].mxu0 %v1096_v50  ;;  %1262 = vmatprep.subr.bf16.mxu1 %v1313_v1 }
  0x23   :  { %v218_v52 = vsel %vm213_vm11, 0, %v163_v47  ;;  %496 = vmatprep.mubr.bf16.mxu0 %v1099_v48  ;;  %1205 = vmatpush3.bf16.msra.mxu0 %v1311_v63 }
  0x24   :  { %v1102_v54 = vcombine.low %v218_v52, %v218_v52  ;;  %v257_v55 = vrot.slane %v1100_v51, 1  ;;  %1206 = vmatprep.subr.bf16.mxu0 %v1312_v0 }
  0x26   :  { %v260_v57 = vrot.slane %v1102_v54, 1  ;;  %v259_v58 = vsel %vm1756_vm14, %v257_v55, %v258_v53 }
  0x27   :  { %1258 = vmatprep.mubr.bf16.mxu1 %v259_v58  ;;  %1207 = vmatpush3.bf16.msra.mxu0 %v1314_v2 }
  0x28   :  { %v261_v59 = vsel %vm1756_vm14, %v258_v53, %v260_v57  ;;  %1208 = vmatprep.subr.bf16.mxu0 %v1315_v3 }
  0x29   :  { %1259 = vmatmul.mubr.bf16.vlgmr.msra.gmra.mrb[0].mxu1 %v261_v59 }
  0x2a   :  { %497 = vmatmul.mubr.bf16.gmra.mrb[4].mxu0 %v1097_v60  ;;  %1263 = vmatpush3.bf16.msra.mxu1 %v1313_v1 }
  0x2b   :  { %1264 = vmatprep.subr.bf16.mxu1 %v1316_v4  ;;  %1209 = vmatpush3.bf16.msra.mxu0 %v1317_v5 }
  0x2c   :  { %1210 = vmatprep.subr.bf16.mxu0 %v1318_v6 }
  0x2e   :  { %1265 = vmatpush3.bf16.msra.mxu1 %v1316_v4 }
  0x2f   :  { %1266 = vmatprep.subr.bf16.mxu1 %v1319_v7  ;;  %1211 = vmatpush3.bf16.msra.mxu0 %v1320_v8 }
  0x30   :  { %1212 = vmatprep.subr.bf16.mxu0 %v1321_v13 }
  0x32   :  { %1267 = vmatpush3.bf16.msra.mxu1 %v1319_v7 }
  0x33   :  { %1268 = vmatprep.subr.bf16.mxu1 %v1322_v14  ;;  %1213 = vmatpush3.bf16.msra.mxu0 %v1323_v15 }
  0x34   :  { %1214 = vmatprep.subr.bf16.mxu0 %v1324_v16 }
  0x36   :  { %1269 = vmatpush3.bf16.msra.mxu1 %v1322_v14 }
  0x37   :  { %1270 = vmatprep.subr.bf16.mxu1 %v1325_v17  ;;  %1215 = vmatpush3.bf16.msra.mxu0 %v1326_v18 }
  0x38   :  { %1216 = vmatprep.subr.bf16.mxu0 %v1327_v19 }
  0x3a   :  { %1271 = vmatpush3.bf16.msra.mxu1 %v1325_v17 }
  0x3b   :  { %1272 = vmatprep.subr.bf16.mxu1 %v1328_v20  ;;  %1217 = vmatpush3.bf16.msra.mxu0 %v1329_v21 }
  0x3c   :  { %1218 = vmatprep.subr.bf16.mxu0 %v1330_v22 }
  0x3e   :  { %1273 = vmatpush3.bf16.msra.mxu1 %v1328_v20 }
  0x3f   :  { %1274 = vmatprep.subr.bf16.mxu1 %v1331_v23  ;;  %1219 = vmatpush3.bf16.msra.mxu0 %v1332_v26  ;;  %v589_v26 = vsub.s32 0, %v1413_v12 }
  0x42   :  { %1275 = vmatpush3.bf16.msra.mxu1 %v1331_v23  ;;  %v582_v23 = vld [vmem:[%s1751_s2] sm:$0x1] }
  0x43   :  { %1276 = vmatprep.subr.bf16.mxu1 %v1333_v28 }
  0x46   :  { %1277 = vmatpush3.bf16.msra.mxu1 %v1333_v28 }
  0xf5   :  { %v1182_v31 = vpop.f32.mrb[0].mxu0 }
  0xf6   :  { %v1183_v32 = vpop.f32.mrb[1].mxu0 }
  0xf7   :  { %v1184_v37 = vadd.f32 %v1183_v32, %v1182_v31  ;;  %v1185_v38 = vpop.f32.mrb[2].mxu0 }
  0xf8   :  { %v1186_v39 = vpop.f32.mrb[3].mxu0 }
  0xf9   :  { %v1187_v41 = vadd.f32 %v1186_v39, %v1185_v38 }
  0xfc   :  { %v1260_v40 = vpop.f32.mrb[0].mxu1 }
  0xfd   :  { %v539_v42 = vpop.f32.mrb[1].mxu1  ;;  %v1188_v47 = vpop.f32.mrb[4].mxu0 }
  0xfe   :  { %v540_v43 = vadd.f32 %v1184_v37, %v539_v42  ;;  %v1261_v44 = vpop.f32.mrb[2].mxu1  ;;  %v1189_v48 = vpop.f32.mrb[5].mxu0  ;;  %v1127_v37 = vld [vmem:[%s1752_s3] ss:$0 sm:$0xff] }
  0xff   :  { %v542_v45 = vpop.f32.mrb[3].mxu1  ;;  %v1190_v51 = vadd.f32 %v1189_v48, %v1188_v47  ;;  %v1191_v52 = vpop.f32.mrb[6].mxu0 }
 0x100   :  { %v543_v46 = vadd.f32 %v1187_v41, %v542_v45  ;;  %v1192_v53 = vpop.f32.mrb[7].mxu0 }
 0x101   :  { %v548_v54 = vadd.f32 %v1260_v40, %v1190_v51  ;;  %v1193_v55 = vadd.f32 %v1192_v53, %v1191_v52 }
 0x102   :  { %v554_v50 = vadd.f32 %v543_v46, %v540_v43 }
 0x103   :  { %v551_v33 = vadd.f32 %v1261_v44, %v1193_v55 }
 0x104   :  { %v555_v57 = vadd.f32 %v554_v50, %v548_v54 }
 0x106   :  { %v556_v35 = vadd.f32 %v555_v57, %v551_v33 }
 0x108   :  { %v557_v58 = vrot.slane %v556_v35, 4 }
 0x10a   :  { %v558_v59 = vadd.f32 %v557_v58, %v556_v35 }
 0x10c   :  { %v559_v60 = vrot.slane %v558_v59, 2 }
 0x10e   :  { %v560_v62 = vadd.f32 %v559_v60, %v558_v59 }
 0x110   :  { %v561_v63 = vrot.slane %v560_v62, 1 }
 0x112   :  { %v562_v0 = vadd.f32 %v561_v63, %v560_v62 }
 0x114   :  { %v563_v1 = vmul.f32 0.03125, %v562_v0 }
 0x116   :  { %v564_v2 = vsub.f32 %v540_v43, %v563_v1  ;;  %v565_v3 = vsub.f32 %v543_v46, %v563_v1  ;;  %v566_v4 = vsub.f32 %v548_v54, %v563_v1  ;;  %v567_v5 = vsub.f32 %v551_v33, %v563_v1 }
 0x118   :  { %v568_v6 = vmul.f32 %v564_v2, %v564_v2  ;;  %v569_v7 = vmul.f32 %v565_v3, %v565_v3  ;;  %v570_v8 = vmul.f32 %v566_v4, %v566_v4  ;;  %v571_v10 = vmul.f32 %v567_v5, %v567_v5 }
 0x11a   :  { %v572_v9 = vadd.f32 %v569_v7, %v568_v6 }
 0x11c   :  { %v573_v13 = vadd.f32 %v572_v9, %v570_v8 }
 0x11e   :  { %v574_v14 = vadd.f32 %v573_v13, %v571_v10 }
 0x120   :  { %v575_v15 = vrot.slane %v574_v14, 4 }
 0x122   :  { %v576_v16 = vadd.f32 %v575_v15, %v574_v14 }
 0x124   :  { %v577_v17 = vrot.slane %v576_v16, 2 }
 0x126   :  { %v578_v18 = vadd.f32 %v577_v17, %v576_v16 }
 0x128   :  { %v579_v19 = vrot.slane %v578_v18, 1 }
 0x12a   :  { %v580_v20 = vadd.f32 %v579_v19, %v578_v18 }
 0x12c   :  { %v581_v21 = vmul.f32 0.03125, %v580_v20  ;;  %v683_v20 = vld [vmem:[#allocation3 + $0x10] sm:$0x1] }
 0x12e   :  { %v583_v22 = vadd.f32 1e-05, %v581_v21 }
 0x130   :  { %1334 = vrsqrt.f32 %v583_v22 }
 0x13a   :  { %v1335_v28 = vpop.eup %1334 }
 0x13b   :  { %v585_v31 = vmul.f32 %v1335_v28, %v582_v23 }
 0x13d   :  { %v590_v32 = vrot.slane %v585_v31, %v589_v26 }
 0x13f   :  { %v595_v38 = vmul.f32 %v590_v32, %v567_v5  ;;  %v592_v39 = vmul.f32 %v590_v32, %v564_v2  ;;  %v593_v40 = vmul.f32 %v590_v32, %v565_v3  ;;  %v594_v41 = vmul.f32 %v590_v32, %v566_v4  ;;  %v677_v4 = vld [vmem:[#allocation3] sm:$0xf] }
 0x141   :  { %v606_v42 = vadd.f32 %v1127_v37, %v595_v38  ;;  %v603_v43 = vadd.f32 %v1127_v37, %v592_v39  ;;  %v604_v44 = vadd.f32 %v1127_v37, %v593_v40  ;;  %v605_v45 = vadd.f32 %v1127_v37, %v594_v41 }
 0x143   :  { %vm607_vm15 = vcmp.gt.f32.partialorder %v603_v43, 0.0  ;;  %vm608_vm1 = vcmp.gt.f32.partialorder %v604_v44, 0.0  ;;  %v611_v46 = vmul.f32 0.1, %v603_v43  ;;  %v612_v47 = vmul.f32 0.1, %v604_v44 }
 0x144   :  { %vm609_vm14 = vcmp.gt.f32.partialorder %v605_v45, 0.0  ;;  %vm610_vm12 = vcmp.gt.f32.partialorder %v606_v42, 0.0  ;;  %v613_v48 = vmul.f32 0.1, %v605_v45  ;;  %v614_v50 = vmul.f32 0.1, %v606_v42 }
 0x145   :  { %v615_v51 = vsel %vm607_vm15, %v603_v43, %v611_v46  ;;  %v616_v52 = vsel %vm608_vm1, %v604_v44, %v612_v47 }
 0x146   :  { %v619_v53 = vpack.c.bf16 %v616_v52, %v615_v51  ;;  %v1162_v54 = vpack.c.bf16 %v615_v51, %v615_v51  ;;  %v1163_v55 = vpack.c.bf16 %v616_v52, %v616_v52  ;;  %v617_v57 = vsel %vm609_vm14, %v605_v45, %v613_v48 }
 0x147   :  { %v618_v33 = vsel %vm610_vm12, %v606_v42, %v614_v50  ;;  %v1164_v35 = vpack.c.bf16 %v617_v57, %v617_v57 }
 0x148   :  { %v638_v58 = vshrl.u32 %v1162_v54, 16  ;;  %v646_v59 = vshrl.u32 %v1163_v55, 16  ;;  %957 = vmatprep.mubr.bf16.mxu0 %v619_v53  ;;  %v620_v60 = vpack.c.bf16 %v618_v33, %v617_v57  ;;  %v1165_v62 = vpack.c.bf16 %v618_v33, %v618_v33 }
 0x149   :  { %v655_v63 = vshrl.u32 %v1164_v35, 16  ;;  %v641_v1 = vshll.u32 %v1162_v54, 16  ;;  %v649_v3 = vshll.u32 %v1163_v55, 16  ;;  %v658_v6 = vshll.u32 %v1164_v35, 16 }
 0x14a   :  { %v640_v0 = vrot.slane %v638_v58, 7  ;;  %v648_v2 = vrot.slane %v646_v59, 7  ;;  %v664_v7 = vshrl.u32 %v1165_v62, 16  ;;  %v667_v17 = vshll.u32 %v1165_v62, 16 }
 0x14b   :  { %v657_v5 = vrot.slane %v655_v63, 7 }
 0x14c   :  { %v643_v8 = vor.u32 %v641_v1, %v640_v0  ;;  %v644_v9 = vrot.slane %v640_v0, 4  ;;  %v651_v10 = vor.u32 %v649_v3, %v648_v2  ;;  %v653_v13 = vrot.slane %v648_v2, 4 }
 0x14d   :  { %v660_v14 = vor.u32 %v658_v6, %v657_v5  ;;  %v662_v15 = vrot.slane %v657_v5, 4  ;;  %v666_v16 = vrot.slane %v664_v7, 7 }
 0x14e   :  { %v652_v18 = vsel %vm1498_vm9, %v644_v9, %v651_v10  ;;  %v678_v19 = vsel %vm1507_vm10, %v643_v8, %v677_v4 }
 0x14f   :  { %679 = vst [vmem:[#allocation3] sm:$0xf] %v678_v19  ;;  %680 = vst [vmem:[#allocation3 + $0x4] sm:$0xf] %v652_v18  ;;  %v661_v21 = vsel %vm1498_vm9, %v653_v13, %v660_v14  ;;  %v669_v22 = vor.u32 %v667_v17, %v666_v16  ;;  %v671_v23 = vrot.slane %v666_v16, 4 }
 0x150   :  { %681 = vst [vmem:[#allocation3 + $0x8] sm:$0xf] %v661_v21 }
 0x151   :  { %v670_v28 = vsel %vm1498_vm9, %v662_v15, %v669_v22  ;;  %v684_v31 = vsel %vm1479_vm5, %v671_v23, %v683_v20  ;;  %vm1780_vm5 = vmpackc.low %vm1573_vm8, %vm1573_vm8  ;;  %vm1781_vm9 = vcmask 1046528  }
 0x152   :  { %682 = vst [vmem:[#allocation3 + $0xc] sm:$0xf] %v670_v28  ;;  %685 = vst [vmem:[#allocation3 + $0x10] sm:$0x1] %v684_v31 }
 0x153   :  { %vm1782_vm10 = vmmov %vm1781_vm9 }
 0x156   :  { %v686_v32 = vld [vmem:[#allocation3] sm:$0xf]  ;;  %v687_v56 = vld [vmem:[#allocation3 + $0x4] sm:$0xf] }
 0x157   :  { %v690_v37 = vld [vmem:[#allocation3] sm:$0xe]  ;;  %v692_v38 = vsel %vm172_vm6, 0, %v686_v32  ;;  %v693_v39 = vsel %vm1513_vm13, 0, %v687_v56  ;;  %v688_v40 = vld [vmem:[#allocation3 + $0x8] sm:$0xf] }
 0x158   :  { %v696_v49 = vsel %vm209_vm7, 0, %v690_v37  ;;  %v697_v36 = vsel %vm210_vm2, 0, %v687_v56  ;;  %v1132_v41 = vcombine.low %v692_v38, %v693_v39  ;;  %v698_v42 = vsel %vm1564_vm3, 0, %v688_v40 }
 0x159   :  { %v1134_v43 = vcombine.low %v696_v49, %v697_v36  ;;  %v689_v44 = vld [vmem:[#allocation3 + $0xc] sm:$0xf]  ;;  %v691_v45 = vld [vmem:[#allocation3 + $0x10] sm:$0x1]  ;;  %v694_v30 = vsel %vm1780_vm5, 0, %v688_v40 }
 0x15a   :  { %958 = vmatmul.mubr.bf16.vlgmr.msra.gmra.mrb[8].mxu0 %v1132_v41  ;;  %v699_v27 = vsel %vm212_vm4, 0, %v689_v44  ;;  %v700_v46 = vsel %vm213_vm11, 0, %v691_v45  ;;  %v695_v51 = vsel %vm1513_vm13, 0, %v689_v44  ;;  %v1051_v45 = vld [vmem:[%s1753_s5] sm:$0x1] }
 0x15b   :  { %965 = vmatprep.mubr.bf16.mxu0 %v620_v60  ;;  %v1135_v11 = vcombine.low %v698_v42, %v699_v27  ;;  %v726_v47 = vrot.slane %v1134_v43, 1  ;;  %v1136_v48 = vcombine.low %v700_v46, %v700_v46  ;;  %v1133_v52 = vcombine.low %v694_v30, %v695_v51 }
 0x15d   :  { %v727_v24 = vrot.slane %v1135_v11, 1  ;;  %v729_v50 = vrot.slane %v1136_v48, 1 }
 0x15f   :  { %v728_v25 = vsel %vm1781_vm9, %v726_v47, %v727_v24  ;;  %v730_v29 = vsel %vm1782_vm10, %v727_v24, %v729_v50  ;;  %v1161_v47 = vld [vmem:[%s1754_s6] ss:$0 sm:$0xff] }
 0x160   :  { %1278 = vmatprep.mubr.bf16.mxu1 %v728_v25 }
 0x161   :  { %1279 = vmatmul.mubr.bf16.vlgmr.msra.gmra.mrb[4].mxu1 %v730_v29 }
 0x162   :  { %966 = vmatmul.mubr.bf16.gmra.mrb[12].mxu0 %v1133_v52 }
 0x22d   :  { %v1220_v53 = vpop.f32.mrb[8].mxu0 }
 0x22e   :  { %v1221_v54 = vpop.f32.mrb[9].mxu0 }
 0x22f   :  { %v1222_v55 = vadd.f32 %v1221_v54, %v1220_v53  ;;  %v1223_v57 = vpop.f32.mrb[10].mxu0 }
 0x230   :  { %v1224_v33 = vpop.f32.mrb[11].mxu0 }
 0x231   :  { %v1225_v35 = vadd.f32 %v1224_v33, %v1223_v57 }
 0x234   :  { %v1280_v34 = vpop.f32.mrb[4].mxu1 }
 0x235   :  { %v1008_v58 = vpop.f32.mrb[5].mxu1  ;;  %v1226_v59 = vpop.f32.mrb[12].mxu0 }
 0x236   :  { %v1009_v60 = vadd.f32 %v1222_v55, %v1008_v58  ;;  %v1281_v61 = vpop.f32.mrb[6].mxu1  ;;  %v1227_v62 = vpop.f32.mrb[13].mxu0 }
 0x237   :  { %v1011_v63 = vpop.f32.mrb[7].mxu1  ;;  %v1228_v0 = vadd.f32 %v1227_v62, %v1226_v59  ;;  %v1229_v1 = vpop.f32.mrb[14].mxu0 }
 0x238   :  { %v1012_v2 = vadd.f32 %v1225_v35, %v1011_v63  ;;  %v1230_v3 = vpop.f32.mrb[15].mxu0 }
 0x239   :  { %v1017_v4 = vadd.f32 %v1280_v34, %v1228_v0  ;;  %v1231_v5 = vadd.f32 %v1230_v3, %v1229_v1 }
 0x23a   :  { %v1023_v6 = vadd.f32 %v1012_v2, %v1009_v60 }
 0x23b   :  { %v1020_v7 = vadd.f32 %v1281_v61, %v1231_v5 }
 0x23c   :  { %v1024_v8 = vadd.f32 %v1023_v6, %v1017_v4 }
 0x23e   :  { %v1025_v9 = vadd.f32 %v1024_v8, %v1020_v7 }
 0x240   :  { %v1026_v10 = vrot.slane %v1025_v9, 4 }
 0x242   :  { %v1027_v13 = vadd.f32 %v1026_v10, %v1025_v9 }
 0x244   :  { %v1028_v14 = vrot.slane %v1027_v13, 2 }
 0x246   :  { %v1029_v15 = vadd.f32 %v1028_v14, %v1027_v13 }
 0x248   :  { %v1030_v16 = vrot.slane %v1029_v15, 1 }
 0x24a   :  { %v1031_v17 = vadd.f32 %v1030_v16, %v1029_v15 }
 0x24c   :  { %v1032_v18 = vmul.f32 0.03125, %v1031_v17 }
 0x24e   :  { %v1033_v19 = vsub.f32 %v1009_v60, %v1032_v18  ;;  %v1034_v20 = vsub.f32 %v1012_v2, %v1032_v18  ;;  %v1035_v21 = vsub.f32 %v1017_v4, %v1032_v18  ;;  %v1036_v22 = vsub.f32 %v1020_v7, %v1032_v18 }
 0x250   :  { %v1037_v23 = vmul.f32 %v1033_v19, %v1033_v19  ;;  %v1038_v28 = vmul.f32 %v1034_v20, %v1034_v20  ;;  %v1039_v31 = vmul.f32 %v1035_v21, %v1035_v21  ;;  %v1040_v56 = vmul.f32 %v1036_v22, %v1036_v22 }
 0x252   :  { %v1041_v32 = vadd.f32 %v1038_v28, %v1037_v23 }
 0x254   :  { %v1042_v37 = vadd.f32 %v1041_v32, %v1039_v31 }
 0x256   :  { %v1043_v38 = vadd.f32 %v1042_v37, %v1040_v56 }
 0x258   :  { %v1044_v39 = vrot.slane %v1043_v38, 4 }
 0x25a   :  { %v1045_v40 = vadd.f32 %v1044_v39, %v1043_v38 }
 0x25c   :  { %v1046_v49 = vrot.slane %v1045_v40, 2 }
 0x25e   :  { %v1047_v36 = vadd.f32 %v1046_v49, %v1045_v40 }
 0x260   :  { %v1048_v41 = vrot.slane %v1047_v36, 1 }
 0x262   :  { %v1049_v42 = vadd.f32 %v1048_v41, %v1047_v36 }
 0x264   :  { %v1050_v43 = vmul.f32 0.03125, %v1049_v42 }
 0x266   :  { %v1052_v44 = vadd.f32 1e-05, %v1050_v43 }
 0x268   :  { %1336 = vrsqrt.f32 %v1052_v44 }
 0x272   :  { %v1337_v27 = vpop.eup %1336 }
 0x273   :  { %v1054_v46 = vmul.f32 %v1337_v27, %v1051_v45 }
 0x275   :  { %v1059_v11 = vrot.slane %v1054_v46, %v589_v26 }
 0x277   :  { %v1061_v48 = vmul.f32 %v1059_v11, %v1033_v19  ;;  %v1062_v24 = vmul.f32 %v1059_v11, %v1034_v20  ;;  %v1063_v50 = vmul.f32 %v1059_v11, %v1035_v21  ;;  %v1064_v30 = vmul.f32 %v1059_v11, %v1036_v22 }
 0x279   :  { %v1072_v51 = vadd.f32 %v1161_v47, %v1061_v48  ;;  %v1073_v25 = vadd.f32 %v1161_v47, %v1062_v24  ;;  %v1074_v29 = vadd.f32 %v1161_v47, %v1063_v50  ;;  %v1075_v52 = vadd.f32 %v1161_v47, %v1064_v30 }
 0x27b   :  { %vm1076_vm13 = vcmp.gt.f32.partialorder %v1072_v51, 0.0  ;;  %vm1077_vm0 = vcmp.gt.f32.partialorder %v1073_v25, 0.0  ;;  %vm1078_vm2 = vcmp.gt.f32.partialorder %v1074_v29, 0.0  ;;  %vm1079_vm3 = vcmp.gt.f32.partialorder %v1075_v52, 0.0 }
 0x27c   :  { %v1080_v53 = vmul.f32 0.1, %v1072_v51  ;;  %v1081_v54 = vmul.f32 0.1, %v1073_v25  ;;  %v1082_v12 = vmul.f32 0.1, %v1074_v29 }
 0x27d   :  { %v1083_v26 = vmul.f32 0.1, %v1075_v52 }
 0x27e   :  { %v1084_v55 = vsel %vm1076_vm13, %v1072_v51, %v1080_v53  ;;  %v1085_v57 = vsel %vm1077_vm0, %v1073_v25, %v1081_v54  ;;  %v1086_v33 = vsel %vm1078_vm2, %v1074_v29, %v1082_v12 }
 0x27f   :  { %v1087_v35 = vsel %vm1079_vm3, %v1075_v52, %v1083_v26  ;;  %1088 = vst [vmem:[%s1755_s7] sm:$0xff] %v1084_v55  ;;  %1089 = vst [vmem:[%s1755_s7 + $0x8] sm:$0xff] %v1085_v57 }
 0x280   :  { %1090 = vst [vmem:[%s1755_s7 + $0x10] sm:$0xff] %v1086_v33  ;;  %1091 = vst [vmem:[%s1755_s7 + $0x18] sm:$0xff] %v1087_v35 }

</bundles_post_ra>
